<compile_context>
chip_gen: v7x
topology: tpu7x:2x2x1
jax: 0.10.0
libtpu: 0.0.40
codegen_flags: <defaults>
</compile_context>

<pallas_src>
import math

import jax
import jax.numpy as jnp
from jax.experimental import pallas as pl
from jax.experimental.pallas import tpu as pltpu


def _flatten_copy_kernel(x_ref, o_ref):
    # Lane-dense 2-D tile copy: (tile_b, tile_f) -> (tile_b, tile_f).
    o_ref[...] = x_ref[...]


_TARGET_BLOCK_BYTES = 2 * 1024 * 1024  # ~2 MiB: 4x (in+out, double-buffered) = 8 MiB,
                                       # safe under scoped VMEM on v5e/v6e/v7x.


def _pick_tiles(b: int, flat: int, itemsize: int):
    """Pick sublane/lane-dense tiles; callers use cdiv grids (ragged edges OK)."""
    # Dtype-aware sublane granule: 8 rows f32, 16 bf16/f16, 32 int8/fp8.
    sub = 8 * max(1, 4 // max(1, itemsize))

    # Lane (flat) tile: largest multiple of 128 <= flat, capped so that a
    # minimal-row block stays <= the target block size.  If flat < 128, the
    # block takes the full flat extent (allowed: equals the array dim).
    if flat >= 128:
        row_min = min(b, sub)
        cap = max(128, (_TARGET_BLOCK_BYTES // max(1, itemsize * row_min) // 128) * 128)
        tile_f = min((flat // 128) * 128, cap)
    else:
        tile_f = flat

    # Row (sublane) tile: multiple of the granule if possible, grown in
    # granule-preserving steps until the block reaches ~2 MiB or covers b.
    if b >= sub:
        tile_b = sub
        max_b = (b // sub) * sub
        while tile_b * 2 <= max_b and tile_b * 2 * tile_f * itemsize <= _TARGET_BLOCK_BYTES:
            tile_b *= 2
    else:
        tile_b = b  # full batch extent (allowed: equals the array dim)

    return max(1, tile_b), max(1, tile_f)


def flatten(x: jax.Array, *, use_kernel: bool = False) -> jax.Array:
    """Equivalent of torch `input_tensor.view(input_tensor.size(0), -1)`.

    Default path is the free metadata-only reshape (fastest on every TPU
    generation).  `use_kernel=True` routes through the Pallas copy kernel,
    useful only as a fusion anchor for adjacent in-kernel work.
    """
    b = x.shape[0]
    flat = math.prod(x.shape[1:]) if x.ndim > 1 else 1

    # Free, metadata-only reshape (contiguous row-major input), identical to
    # torch .view(B, -1) semantics.
    x2 = x.reshape(b, flat)

    # No fusion partner / degenerate shapes: no kernel at all.
    if not use_kernel or b == 0 or flat == 0:
        return x2

    itemsize = jnp.dtype(x.dtype).itemsize
    tile_b, tile_f = _pick_tiles(b, flat, itemsize)
    grid = (pl.cdiv(b, tile_b), pl.cdiv(flat, tile_f))

    grid_spec = pltpu.PrefetchScalarGridSpec(
        num_scalar_prefetch=0,
        grid=grid,
        in_specs=[pl.BlockSpec((tile_b, tile_f), lambda i, j: (i, j))],
        out_specs=pl.BlockSpec((tile_b, tile_f), lambda i, j: (i, j)),
    )

    return pl.pallas_call(
        _flatten_copy_kernel,
        out_shape=jax.ShapeDtypeStruct((b, flat), x.dtype),
        grid_spec=grid_spec,
        input_output_aliases={0: 0},
        cost_estimate=pl.CostEstimate(
            flops=0,
            transcendentals=0,
            bytes_accessed=2 * b * flat * itemsize,
        ),
        compiler_params=pltpu.CompilerParams(
            dimension_semantics=("parallel", "parallel"),
        ),
    )(x2)


if __name__ == "__main__":
    key = jax.random.PRNGKey(0)
    # Small NCHW input consistent with the module's usage (conv feature maps).
    x = jax.random.normal(key, (2, 4, 16, 16), dtype=jnp.float32)
    ref = x.reshape(x.shape[0], -1)

    # Fast (default, no-kernel) path.
    out_fast = jax.block_until_ready(flatten(x))
    assert out_fast.shape == (2, 4 * 16 * 16)
    assert out_fast.dtype == x.dtype
    assert bool(jnp.array_equal(out_fast, ref))

    # Pallas kernel path (fusion-anchor variant) — run the kernel once.
    out_kernel = jax.block_until_ready(flatten(x, use_kernel=True))
    assert out_kernel.shape == (2, 4 * 16 * 16)
    assert out_kernel.dtype == x.dtype
    assert bool(jnp.array_equal(out_kernel, ref))

    print("KERNEL_OK")
</pallas_src>

<mosaic_0001>
module attributes {stable_mosaic.version = 11 : i64} {
  func.func @_flatten_copy_kernel(%arg0: i32, %arg1: i32, %arg2: memref<2x1024xf32, #tpu.memory_space<vmem>>, %arg3: memref<2x1024xf32, #tpu.memory_space<vmem>>) attributes {dimension_semantics = [#tpu.dimension_semantics<parallel>, #tpu.dimension_semantics<parallel>], iteration_bounds = array<i64: 1, 1>, scalar_prefetch = 0 : i64, scratch_operands = 0 : i64, tpu.core_type = #tpu.core_type<tc>, window_params = [{transform_indices = @transform_0, window_bounds = array<i64: 2, 1024>}, {transform_indices = @transform_1, window_bounds = array<i64: 2, 1024>}]} {
    %c0 = arith.constant 0 : index
    %c0_0 = arith.constant 0 : index
    %0 = vector.load %arg2[%c0, %c0_0] : memref<2x1024xf32, #tpu.memory_space<vmem>>, vector<2x1024xf32>
    %c0_1 = arith.constant 0 : index
    %c0_2 = arith.constant 0 : index
    %1 = vector.load %arg3[%c0_1, %c0_2] : memref<2x1024xf32, #tpu.memory_space<vmem>>, vector<2x1024xf32>
    tpu.vector_store %arg3[%c0_1, %c0_2], %0 {strides = array<i32>} : memref<2x1024xf32, #tpu.memory_space<vmem>>, vector<2x1024xf32>,
    return
  }
  func.func @transform_0(%arg0: i32, %arg1: i32) -> (i32, i32) {
    %c0_i32 = arith.constant 0 : i32
    return %arg0, %arg1 : i32, i32
  }
  func.func @transform_1(%arg0: i32, %arg1: i32) -> (i32, i32) {
    %c0_i32 = arith.constant 0 : i32
    return %arg0, %arg1 : i32, i32
  }
}

</mosaic_0001>

<bundles_post_ra>
// kernel: tpu_custom_call.1
= control target key start
LH: loop header
LB: loop body
LE: loop exit
PB: predicated region body
PF: predicated region fallthrough
CT: control target
= control target key end

     0   :  { %6 = vsyncpa [#allocation3], 0  ;;  %s126_s0 = inlined_call_operand.hbm [shape: f32[2,1024], index: 0, kind: input, shape index: {}, may-alias: {0,1}]   ;;  %s127_s1 = inlined_call_operand.hbm [shape: f32[2,1024], index: 1, kind: output, shape index: {}, may-alias: {0,1}]  }
   0x1   :  { %7 = vsyncpa [#allocation4], 0  ;;  %s90_s6 = smov [#allocation2]   ;;  %s42_s10 = scalar_lea.hbm %s126_s0, 256 }
   0x2   :  { %s14_s7 = sshll.u32 %s90_s6, 4  ;;  %p43_p0 = scmp.ne.s32.totalorder %s126_s0, %s42_s10  ;;  %s15_s7 = int_to_ptr.vmem [resolvable:$true] %s14_s7 }
   0x3   :  { %p46_p1 = scmp.lt.u32.totalorder %s42_s10, %s126_s0 }
   0x5   :  { %p48_p2 = pnand %p46_p1, %p43_p0 }
   0x7   :  { %51 = shalt.err (!%p48_p2)
}
   0x8   :  { %s52_s15 = scalar_lea.vmem %s15_s7, 256  ;;  %p57_p4 = scmp.lt.s32.totalorder %s15_s7, %s15_s7 }
   0x9   :  { %p53_p3 = scmp.ne.s32.totalorder %s15_s7, %s52_s15  ;;  %p58_p5 = scmp.lt.s32.totalorder %s52_s15, %s52_s15 }
   0xb   :  { %p59_p6 = por %p58_p5, %p57_p4 }
   0xd   :  { %p60_p7 = pnand %p59_p6, %p53_p3 }
   0xf   :  { %63 = shalt.err (!%p60_p7)
}
  0x10   :  { %17 = dma.hbm_to_vmem [thread:$0]  %s126_s0, 256, %s15_s7, [#allocation3]  }
  0x11   :  { %86 = dma.done.wait [#allocation3], 256  }
  0x12   :  { %87 = vsyncadd [#allocation3], 4294967040  ;;  %s91_s18 = smov [#allocation5]   ;;  %v21_v0 = vld [vmem:[#allocation2] sm:$0xff]  ;;  %v22_v1 = vld [vmem:[#allocation2 + $0x8] sm:$0xff] }
  0x13   :  { %s31_s19 = sshll.u32 %s91_s18, 4  ;;  %23 = vst [vmem:[#allocation5] sm:$0xff] %v21_v0  ;;  %24 = vst [vmem:[#allocation5 + $0x8] sm:$0xff] %v22_v1  ;;  %s32_s19 = int_to_ptr.vmem [resolvable:$true] %s31_s19 }
  0x14   :  { %s64_s20 = scalar_lea.vmem %s32_s19, 256  ;;  %p69_p9 = scmp.lt.s32.totalorder %s32_s19, %s32_s19 }
  0x15   :  { %p65_p8 = scmp.ne.s32.totalorder %s32_s19, %s64_s20  ;;  %p70_p10 = scmp.lt.s32.totalorder %s64_s20, %s64_s20 }
  0x17   :  { %p71_p11 = por %p70_p10, %p69_p9 }
  0x19   :  { %p72_p12 = pnand %p71_p11, %p65_p8 }
  0x1b   :  { %75 = shalt.err (!%p72_p12)
}
  0x1c   :  { %s76_s0 = scalar_lea.hbm %s127_s1, 256 }
  0x1d   :  { %p77_p13 = scmp.ne.s32.totalorder %s127_s1, %s76_s0  ;;  %p80_p0 = scmp.lt.u32.totalorder %s76_s0, %s127_s1 }
  0x1f   :  { %p82_p1 = pnand %p80_p0, %p77_p13 }
  0x21   :  { %85 = shalt.err (!%p82_p1)
}
  0x22   :  { %34 = dma.vmem_to_hbm [thread:$0]  %s32_s19, 256, %s127_s1, [#allocation4]  }
  0x23   :  { %88 = dma.done.wait [#allocation4], 256  }
  0x24   :  { %89 = vsyncadd [#allocation4], 4294967040 }
  0x25   :  { %38 = vsyncpa [#allocation3], 1 }
  0x26   :  { %39 = vsyncpa [#allocation4], 1 }

</bundles_post_ra>
